<compile_context>
chip_gen: v7x
topology: tpu7x:2x2x1
jax: 0.10.0
libtpu: 0.0.40
codegen_flags: <defaults>
</compile_context>

<pallas_src>
import jax
import jax.numpy as jnp
from jax.experimental import pallas as pl
from jax.experimental.pallas import tpu as pltpu

IN_F = 20
HID_F = 25
OUT_F = 3
LANE = 128

# Default lane (batch) tile.  With the transposed, lane-dense layout a 16K-lane
# f32 x block is only ~1.5 MiB (24 sublanes x 16384 lanes x 4 B), so double
# buffering stays far under the 32 MiB scoped-VMEM limit on every generation
# (incl. v7x's 64 MiB physical VMEM).
DEFAULT_BLOCK_B = 16384

_COMPILER_PARAMS = pltpu.CompilerParams(
    dimension_semantics=("parallel",),      # independent batch tiles -> megacore on v7x
    vmem_limit_bytes=32 * 1024 * 1024,
)


def _round_up(n, m):
    return ((n + m - 1) // m) * m


def _cdiv(a, b):
    return (a + b - 1) // b


def _tiling(batch, block_b):
    """Returns (padded_batch, lane_tile, grid).  lane_tile is a multiple of 128."""
    bp = _round_up(max(int(batch), 1), LANE)
    cap = max(LANE, _round_up(int(block_b), LANE))
    # Aim for >=2 grid steps whenever possible so ("parallel",) can shard the
    # batch grid across both TensorCores on v7x.
    half = max(LANE, _round_up(_cdiv(bp, 2), LANE))
    tb = min(cap, half, bp)
    grid = _cdiv(bp, tb)                    # ragged last block is masked by Pallas
    return bp, tb, (grid,)


def _weight_specs():
    # Tiny, constant index_map -> VMEM-resident across the whole batch grid.
    return [
        pl.BlockSpec((HID_F, IN_F), lambda i: (0, 0)),   # w1 (25, 20)
        pl.BlockSpec((HID_F, 1), lambda i: (0, 0)),      # b1 (25, 1)
        pl.BlockSpec((OUT_F, HID_F), lambda i: (0, 0)),  # w2 (3, 25)
        pl.BlockSpec((OUT_F, 1), lambda i: (0, 0)),      # b2 (3, 1)
    ]


def _mlp_kernel(xT_ref, w1_ref, b1_ref, w2_ref, b2_ref, oT_ref):
    # xT: (IN_F, tb)  ->  hT = w1 @ xT : (HID_F, tb)  ->  yT = w2 @ hT : (OUT_F, tb)
    hT = jnp.dot(w1_ref[...], xT_ref[...], preferred_element_type=jnp.float32)
    hT = jnp.maximum(hT + b1_ref[...], 0.0)                      # bias + ReLU
    yT = jnp.dot(w2_ref[...], hT, preferred_element_type=jnp.float32)
    yT = jnp.maximum(yT + b2_ref[...], 0.0)                      # bias + ReLU
    oT_ref[...] = yT.astype(oT_ref.dtype)


def _run_mlp_transposed(xT, w1, b1, w2, b2, batch, block_b):
    """xT: (IN_F, batch) -> (batch, OUT_F)."""
    bp, tb, grid = _tiling(batch, block_b)
    if bp != batch:
        xT = jnp.pad(xT, ((0, 0), (0, bp - batch)))
    b1c = jnp.reshape(b1, (HID_F, 1)).astype(jnp.float32)
    b2c = jnp.reshape(b2, (OUT_F, 1)).astype(jnp.float32)
    outT = pl.pallas_call(
        _mlp_kernel,
        out_shape=jax.ShapeDtypeStruct((OUT_F, bp), jnp.float32),
        grid=grid,
        in_specs=[pl.BlockSpec((IN_F, tb), lambda i: (0, i))] + _weight_specs(),
        out_specs=pl.BlockSpec((OUT_F, tb), lambda i: (0, i)),
        compiler_params=_COMPILER_PARAMS,
    )(xT, w1, b1c, w2, b2c)
    return outT[:, :batch].T                  # (batch, 3)


def model_prop_rand_net(key, w1, b1, w2, b2, batch, *, block_b=DEFAULT_BLOCK_B):
    """Full forward semantics of ModelPropRandNet.

    `inp.normal_()` discards the caller's input, so fresh standard normals are
    drawn from `key` (wrapper-side) and pushed through the MLP.  Returns a
    (batch, 3) float32 array.  Note: the random values depend only on `key`,
    not on the tile size.
    """
    xT = jax.random.normal(key, (IN_F, batch), jnp.float32)   # generated lane-dense
    return _run_mlp_transposed(xT, w1, b1, w2, b2, batch, block_b)


def model_prop_rand_net_from_x(x, w1, b1, w2, b2, *, block_b=DEFAULT_BLOCK_B):
    """Same forward consuming a caller-provided (already normal_-filled) x of
    shape (batch, IN_F).  Used for exact numerical verification."""
    batch = x.shape[0]
    xT = jnp.transpose(x).astype(jnp.float32)                 # (IN_F, batch)
    return _run_mlp_transposed(xT, w1, b1, w2, b2, batch, block_b)


def init_params(key):
    """Deterministic init mimicking torch.nn.Linear defaults (U(+/-1/sqrt(fan_in)))."""
    k1, k2, k3, k4 = jax.random.split(key, 4)
    bound1 = 1.0 / jnp.sqrt(IN_F)
    bound2 = 1.0 / jnp.sqrt(HID_F)
    w1 = jax.random.uniform(k1, (HID_F, IN_F), jnp.float32, -bound1, bound1)
    b1 = jax.random.uniform(k2, (HID_F,), jnp.float32, -bound1, bound1)
    w2 = jax.random.uniform(k3, (OUT_F, HID_F), jnp.float32, -bound2, bound2)
    b2 = jax.random.uniform(k4, (OUT_F,), jnp.float32, -bound2, bound2)
    return w1, b1, w2, b2


def _reference(x, w1, b1, w2, b2):
    h = jnp.maximum(x @ w1.T + b1, 0.0)
    return jnp.maximum(h @ w2.T + b2, 0.0)


if __name__ == "__main__":
    key = jax.random.PRNGKey(0)
    k_params, k_in1, k_in2, k_rng = jax.random.split(key, 4)
    w1, b1, w2, b2 = init_params(k_params)

    # (1) Exact-reference check, small batch (single 128-lane tile + tail padding).
    B1 = 20
    x1 = jax.random.normal(k_in1, (B1, IN_F), jnp.float32)
    out1 = jax.block_until_ready(model_prop_rand_net_from_x(x1, w1, b1, w2, b2))
    ref1 = _reference(x1, w1, b1, w2, b2)
    assert out1.shape == (B1, OUT_F)
    assert jnp.allclose(out1, ref1, atol=1e-5, rtol=1e-5)

    # (2) Multi-tile grid: batch=300 -> padded 384 lanes.
    #     block_b=128 -> 3 grid steps; default block_b -> 2 steps (ragged last block).
    B2 = 300
    x2 = jax.random.normal(k_in2, (B2, IN_F), jnp.float32)
    ref2 = _reference(x2, w1, b1, w2, b2)
    out2a = jax.block_until_ready(
        model_prop_rand_net_from_x(x2, w1, b1, w2, b2, block_b=128))
    out2b = jax.block_until_ready(model_prop_rand_net_from_x(x2, w1, b1, w2, b2))
    assert out2a.shape == (B2, OUT_F) and out2b.shape == (B2, OUT_F)
    assert jnp.allclose(out2a, ref2, atol=1e-5, rtol=1e-5)
    assert jnp.allclose(out2b, ref2, atol=1e-5, rtol=1e-5)

    # (3) Primary fused forward (normal_() semantics): shape / ReLU-range checks
    #     (no externally-reproducible reference stream exists for normal_()).
    out_rng = jax.block_until_ready(
        model_prop_rand_net(k_rng, w1, b1, w2, b2, batch=B1, block_b=128))
    assert out_rng.shape == (B1, OUT_F)
    assert bool(jnp.all(jnp.isfinite(out_rng)))
    assert bool(jnp.all(out_rng >= 0.0))      # final ReLU

    print("KERNEL_OK")
</pallas_src>

<mosaic_0001>
module attributes {stable_mosaic.version = 11 : i64} {
  func.func @_mlp_kernel(%arg0: i32, %arg1: memref<20x128xf32, #tpu.memory_space<vmem>>, %arg2: memref<25x20xf32, #tpu.memory_space<vmem>>, %arg3: memref<25x1xf32, #tpu.memory_space<vmem>>, %arg4: memref<3x25xf32, #tpu.memory_space<vmem>>, %arg5: memref<3x1xf32, #tpu.memory_space<vmem>>, %arg6: memref<3x128xf32, #tpu.memory_space<vmem>>) attributes {dimension_semantics = [#tpu.dimension_semantics<parallel>], iteration_bounds = array<i64: 1>, scalar_prefetch = 0 : i64, scratch_operands = 0 : i64, tpu.core_type = #tpu.core_type<tc>, window_params = [{transform_indices = @transform_0, window_bounds = array<i64: 20, 128>}, {pipeline_mode = #tpu.pipeline_mode<synchronous>, transform_indices = @transform_1, window_bounds = array<i64: 25, 20>}, {pipeline_mode = #tpu.pipeline_mode<synchronous>, transform_indices = @transform_2, window_bounds = array<i64: 25, 1>}, {pipeline_mode = #tpu.pipeline_mode<synchronous>, transform_indices = @transform_3, window_bounds = array<i64: 3, 25>}, {pipeline_mode = #tpu.pipeline_mode<synchronous>, transform_indices = @transform_4, window_bounds = array<i64: 3, 1>}, {transform_indices = @transform_5, window_bounds = array<i64: 3, 128>}]} {
    %c0 = arith.constant 0 : index
    %c0_0 = arith.constant 0 : index
    %0 = vector.load %arg2[%c0, %c0_0] : memref<25x20xf32, #tpu.memory_space<vmem>>, vector<25x20xf32>
    %c0_1 = arith.constant 0 : index
    %c0_2 = arith.constant 0 : index
    %1 = vector.load %arg1[%c0_1, %c0_2] : memref<20x128xf32, #tpu.memory_space<vmem>>, vector<20x128xf32>
    %cst = arith.constant dense<0.000000e+00> : vector<25x128xf32>
    %2 = tpu.matmul %0, %1, %cst {dimension_numbers = #tpu.dot_dimension_numbers<[1], [0], [0], [1], [0, 0, 1, 1], [], []>} : vector<25x20xf32>, vector<20x128xf32>, vector<25x128xf32> -> vector<25x128xf32>
    %c0_3 = arith.constant 0 : index
    %c0_4 = arith.constant 0 : index
    %3 = vector.load %arg3[%c0_3, %c0_4] : memref<25x1xf32, #tpu.memory_space<vmem>>, vector<25x1xf32>
    %4 = vector.broadcast %3 : vector<25x1xf32> to vector<25x128xf32>
    %5 = arith.addf %2, %4 : vector<25x128xf32>
    %cst_5 = arith.constant 0.000000e+00 : f32
    %6 = vector.broadcast %cst_5 : f32 to vector<25x128xf32>
    %7 = arith.maximumf %5, %6 : vector<25x128xf32>
    %c0_6 = arith.constant 0 : index
    %c0_7 = arith.constant 0 : index
    %8 = vector.load %arg4[%c0_6, %c0_7] : memref<3x25xf32, #tpu.memory_space<vmem>>, vector<3x25xf32>
    %cst_8 = arith.constant dense<0.000000e+00> : vector<3x128xf32>
    %9 = tpu.matmul %8, %7, %cst_8 {dimension_numbers = #tpu.dot_dimension_numbers<[1], [0], [0], [1], [0, 0, 1, 1], [], []>} : vector<3x25xf32>, vector<25x128xf32>, vector<3x128xf32> -> vector<3x128xf32>
    %c0_9 = arith.constant 0 : index
    %c0_10 = arith.constant 0 : index
    %10 = vector.load %arg5[%c0_9, %c0_10] : memref<3x1xf32, #tpu.memory_space<vmem>>, vector<3x1xf32>
    %11 = vector.broadcast %10 : vector<3x1xf32> to vector<3x128xf32>
    %12 = arith.addf %9, %11 : vector<3x128xf32>
    %cst_11 = arith.constant 0.000000e+00 : f32
    %13 = vector.broadcast %cst_11 : f32 to vector<3x128xf32>
    %14 = arith.maximumf %12, %13 : vector<3x128xf32>
    %c0_12 = arith.constant 0 : index
    %c0_13 = arith.constant 0 : index
    %15 = vector.load %arg6[%c0_12, %c0_13] : memref<3x128xf32, #tpu.memory_space<vmem>>, vector<3x128xf32>
    tpu.vector_store %arg6[%c0_12, %c0_13], %14 {strides = array<i32>} : memref<3x128xf32, #tpu.memory_space<vmem>>, vector<3x128xf32>,
    return
  }
  func.func @transform_0(%arg0: i32) -> (i32, i32) {
    %c0_i32 = arith.constant 0 : i32
    %c0_i32_0 = arith.constant 0 : i32
    return %c0_i32, %arg0 : i32, i32
  }
  func.func @transform_1(%arg0: i32) -> (i32, i32) {
    %c0_i32 = arith.constant 0 : i32
    %c0_i32_0 = arith.constant 0 : i32
    %c0_i32_1 = arith.constant 0 : i32
    return %c0_i32, %c0_i32_0 : i32, i32
  }
  func.func @transform_2(%arg0: i32) -> (i32, i32) {
    %c0_i32 = arith.constant 0 : i32
    %c0_i32_0 = arith.constant 0 : i32
    %c0_i32_1 = arith.constant 0 : i32
    return %c0_i32, %c0_i32_0 : i32, i32
  }
  func.func @transform_3(%arg0: i32) -> (i32, i32) {
    %c0_i32 = arith.constant 0 : i32
    %c0_i32_0 = arith.constant 0 : i32
    %c0_i32_1 = arith.constant 0 : i32
    return %c0_i32, %c0_i32_0 : i32, i32
  }
  func.func @transform_4(%arg0: i32) -> (i32, i32) {
    %c0_i32 = arith.constant 0 : i32
    %c0_i32_0 = arith.constant 0 : i32
    %c0_i32_1 = arith.constant 0 : i32
    return %c0_i32, %c0_i32_0 : i32, i32
  }
  func.func @transform_5(%arg0: i32) -> (i32, i32) {
    %c0_i32 = arith.constant 0 : i32
    %c0_i32_0 = arith.constant 0 : i32
    return %c0_i32, %arg0 : i32, i32
  }
}

</mosaic_0001>

<bundles_post_ra>
// kernel: tpu_custom_call.1
= control target key start
LH: loop header
LB: loop body
LE: loop exit
PB: predicated region body
PF: predicated region fallthrough
CT: control target
= control target key end

     0   :  { %vm52_vm0 = vcmask 162816   ;;  %vm65_vm1 = vcmask 1043456   ;;  %v344_v5 = vmov 0   ;;  %s437_s0 = inlined_call_operand.vmem [shape: f32[20,128], index: 0, kind: input, shape index: {}]   ;;  %s438_s1 = inlined_call_operand.vmem [shape: f32[25,20], index: 1, kind: input, shape index: {}]   ;;  %s439_s2 = inlined_call_operand.vmem [shape: f32[25,1], index: 2, kind: input, shape index: {}]   ;;  %s440_s3 = inlined_call_operand.vmem [shape: f32[3,25], index: 3, kind: input, shape index: {}]   ;;  %s441_s4 = inlined_call_operand.vmem [shape: f32[3,1], index: 4, kind: input, shape index: {}]   ;;  %s442_s5 = inlined_call_operand.hbm [shape: f32[3,128], index: 5, kind: output, shape index: {}]  }
   0x1   :  { %v25_v0 = vld [vmem:[%s437_s0] sm:$0xff]  ;;  %v26_v1 = vld [vmem:[%s437_s0 + $0x8] sm:$0xff]  ;;  %v27_v4 = vld [vmem:[%s437_s0 + $0x10] sm:$0xf]  ;;  %318 = vset.pattern.permute.xlu0 %v344_v5  ;;  %319 = vset.pattern.permute.xlu1 %v344_v5 }
   0x2   :  { %v301_v2 = vpack.c.bf16 %v26_v1, %v25_v0  ;;  %v21_v3 = vld [vmem:[%s438_s1] sm:$0xff]  ;;  %v30_v7 = vld [vmem:[%s439_s2 + $0x10] sm:$0xff]  ;;  %v29_v8 = vld [vmem:[%s439_s2 + $0x8] sm:$0xff] }
   0x3   :  { %284 = vmatprep.mubr.msk.f32.mxu0 %vm52_vm0, %v21_v3  ;;  %v28_v6 = vld [vmem:[%s439_s2] sm:$0xff] }
   0x4   :  { %302 = vmatprep.subr.bf16.mxu0 %v301_v2  ;;  %34 = vperm.xlu0 %318, %v28_v6  }
   0x5   :  { %304 = vmatpush3.bf16.msra.mxu0 %v301_v2 }
   0x6   :  { %10 = vsyncpa [#allocation3], 0  ;;  %282 = vmatprep.subr.msk.mxu0 %vm65_vm1, %v27_v4  ;;  %44 = vperm.xlu1 %319, %v30_v7   ;;  %v22_v9 = vld [vmem:[%s438_s1 + $0x8] sm:$0xff]  ;;  %v31_v10 = vld [vmem:[%s439_s2 + $0x18] sm:$0x1]  ;;  %v345_v14 = vmov 0.0|0.0  }
   0x7   :  { %v23_v11 = vld [vmem:[%s438_s1 + $0x10] sm:$0xff]  ;;  %v159_v12 = vld [vmem:[%s441_s4] sm:$0x7]  ;;  %v24_v13 = vld [vmem:[%s438_s1 + $0x18] sm:$0x1]  ;;  %305 = vmatprep.subr.bf16.mxu1 %v345_v14  ;;  %vm346_vm2 = vmmov 0  }
   0x8   :  { %39 = vperm.xlu0 %318, %v29_v8   ;;  %v347_v15 = vmov 0.0   ;;  %vm169_vm3 = vcmask 1040384   ;;  %vm348_vm4 = vmmov 1   ;;  %v158_v34 = vld [vmem:[%s440_s3] sm:$0x7]  ;;  %vm165_vm6 = vcmask 203776  }
   0x9   :  { %283 = vmatpush3.msk.msra.mxu0 %vm65_vm1, %v27_v4  ;;  %298 = vmatprep.mubr.msk.f32.mxu1 %vm346_vm2, %v347_v15  ;;  %vm310_vm5 = vmpackc.low %vm169_vm3, %vm348_vm4  ;;  %s349_s4 = smov [#allocation2]  }
   0xa   :  { %285 = vmatmul.mubr.msk.f32.vlgmr.msra.gmra.mrb[0].mxu0 %vm52_vm0, %v22_v9  ;;  %49 = vperm.xlu1 %319, %v31_v10   ;;  %s251_s16 = sshll.u32 %s349_s4, 4  ;;  %s252_s16 = int_to_ptr.vmem [resolvable:$true] %s251_s16 }
   0xb   :  { %287 = vmatprep.mubr.msk.f32.mxu0 %vm52_vm0, %v23_v11  ;;  %s320_s17 = scalar_lea.vmem %s252_s16, 64  ;;  %p325_p1 = scmp.lt.s32.totalorder %s252_s16, %s252_s16 }
   0xc   :  { %162 = vperm.xlu0 %318, %v159_v12   ;;  %p321_p0 = scmp.ne.s32.totalorder %s252_s16, %s320_s17  ;;  %p326_p2 = scmp.lt.s32.totalorder %s320_s17, %s320_s17 }
   0xe   :  { %288 = vmatmul.mubr.msk.f32.gmra.mrb[2].mxu0 %vm52_vm0, %v24_v13  ;;  %p327_p3 = por %p326_p2, %p325_p1 }
  0x10   :  { %p328_p4 = pnand %p327_p3, %p321_p0 }
  0x83   :  { %v35_v16 = vpop.permute.xlu0 %34 }
  0x85   :  { %v45_v17 = vpop.permute.xlu1 %44 }
  0x87   :  { %v40_v18 = vpop.permute.xlu0 %39 }
  0x89   :  { %v50_v24 = vpop.permute.xlu1 %49 }
  0x8b   :  { %v163_v35 = vpop.permute.xlu0 %162 }
  0xdd   :  { %v286_v19 = vpop.f32.mrb[0].mxu0 }
  0xde   :  { %v141_v20 = vadd.f32 %v286_v19, %v40_v18  ;;  %v135_v21 = vpop.f32.mrb[1].mxu0 }
  0xdf   :  { %v136_v22 = vadd.f32 %v135_v21, %v35_v16 }
  0xe0   :  { %v155_v23 = vmax.f32 %v141_v20, 0.0 }
  0xe1   :  { %v154_v25 = vmax.f32 %v136_v22, 0.0  ;;  %v289_v26 = vpop.f32.mrb[2].mxu0 }
  0xe2   :  { %v151_v27 = vadd.f32 %v289_v26, %v50_v24  ;;  %v145_v28 = vpop.f32.mrb[3].mxu0 }
  0xe3   :  { %v146_v29 = vadd.f32 %v145_v28, %v45_v17  ;;  %v306_v30 = vpack.c.bf16 %v155_v23, %v154_v25 }
  0xe4   :  { %v157_v31 = vmax.f32 %v151_v27, 0.0 }
  0xe5   :  { %v156_v32 = vmax.f32 %v146_v29, 0.0  ;;  %307 = vmatpush3.bf16.msra.mxu1 %v306_v30 }
  0xe6   :  { %308 = vmatprep.subr.bf16.mxu1 %v345_v14 }
  0xe7   :  { %v309_v33 = vpack.c.bf16 %v157_v31, %v156_v32 }
  0xe9   :  { %311 = vmatpush3.bf16.msk.msra.mxu1 %vm310_vm5, %v309_v33 }
  0xec   :  { %299 = vmatmul.mubr.msk.f32.vlgmr.msra.gmra.mrb[0].mxu1 %vm165_vm6, %v158_v34 }
 0x1bf   :  { %v239_v36 = vpop.f32.mrb[0].mxu1 }
 0x1c0   :  { %v240_v37 = vadd.f32 %v239_v36, %v163_v35  ;;  %v300_v38 = vpop.f32.mrb[1].mxu1 }
 0x1c2   :  { %v243_v39 = vmax.f32 %v240_v37, 0.0 }
 0x1c4   :  { %244 = vst [vmem:[#allocation2] sm:$0x7] %v243_v39 }
 0x1c5   :  { %331 = shalt.err (!%p328_p4)
}
 0x1c6   :  { %s332_s19 = scalar_lea.hbm %s442_s5, 64 }
 0x1c7   :  { %p333_p5 = scmp.ne.s32.totalorder %s442_s5, %s332_s19  ;;  %p336_p6 = scmp.lt.u32.totalorder %s332_s19, %s442_s5 }
 0x1c9   :  { %p338_p7 = pnand %p336_p6, %p333_p5 }
 0x1cb   :  { %341 = shalt.err (!%p338_p7)
}
 0x1cc   :  { %254 = dma.vmem_to_hbm [thread:$0]  %s252_s16, 64, %s442_s5, [#allocation3]  }
 0x1cd   :  { %342 = dma.done.wait [#allocation3], 64  }
 0x1ce   :  { %343 = vsyncadd [#allocation3], 4294967232 }
 0x1cf   :  { %258 = vsyncpa [#allocation3], 1 }

</bundles_post_ra>
